<compile_context>
chip_gen: v7x
topology: tpu7x:2x2x1
jax: 0.10.0
libtpu: 0.0.40
codegen_flags: <defaults>
</compile_context>

<pallas_src>
import math

import jax
import jax.numpy as jnp
from jax.experimental import pallas as pl
from jax.experimental.pallas import tpu as pltpu


def _round_up(x, m):
    return ((x + m - 1) // m) * m


def _physical_vmem_bytes(default=64 * 1024 * 1024):
    """Best-effort physical VMEM query; conservative (v7x-sized) fallback."""
    try:
        info = pltpu.get_tpu_info()
        for attr in ("vmem_capacity_bytes", "vmem_size_bytes", "vmem_bytes"):
            v = getattr(info, attr, None)
            if v:
                return int(v)
    except Exception:
        pass
    return default


def _fc_kernel(x_ref, w_ref, b_ref, o_ref, acc_ref):
    # x_ref: (tm, tk); w_ref: (tk, tn)  [weight pre-transposed to (K, N) in the
    # wrapper, fused with the bf16 cast -> plain A@B on the MXU, no per-step
    # XLU transpose]; b_ref: (1, tn) f32; acc_ref: (tm, tn) f32 scratch that
    # persists across the K grid axis.
    @pl.when(pl.program_id(2) == 0)
    def _init():
        acc_ref[...] = jnp.zeros_like(acc_ref)

    acc_ref[...] += jnp.dot(x_ref[...], w_ref[...],
                            preferred_element_type=jnp.float32)

    @pl.when(pl.program_id(2) == pl.num_programs(2) - 1)
    def _finalize():
        o_ref[...] = (acc_ref[...] + b_ref[...]).astype(o_ref.dtype)


def fc_l_forward(x, weight, bias, *, tm=256, tn=None, tk=None,
                 compute_dtype=jnp.bfloat16):
    """Pallas nn.Linear forward: y = x @ weight.T + bias.

    x:      (M, K) float
    weight: (N, K) float  (PyTorch layout; transposed to (K, N) here, fused
            with the compute_dtype cast so it costs no extra HBM pass on the
            default bf16 path)
    bias:   (N,)
    compute_dtype: matmul operand dtype (default bf16 -- the MXU is natively
            bf16 on v5e/v6e/v7x and XLA's default precision truncates f32
            operands anyway; f32 storage would just double HBM traffic).
            Accumulation is always f32; the output keeps x's dtype.
    """
    M, K = x.shape
    N, K2 = weight.shape
    assert K == K2 and bias.shape == (N,)
    out_dtype = x.dtype

    if compute_dtype is not None:
        x = x.astype(compute_dtype)
        w_kn = weight.astype(compute_dtype).T        # fused cast+transpose
    else:
        # Non-default f32 path: the transpose is one extra (weight-sized) XLA
        # pass; note the MXU still runs at default (bf16-truncating) precision.
        w_kn = weight.T
    bias2d = bias.astype(jnp.float32).reshape(1, N)

    xb = jnp.dtype(x.dtype).itemsize
    wb = jnp.dtype(w_kn.dtype).itemsize
    ob = jnp.dtype(out_dtype).itemsize

    # ---- generation-aware VMEM budget -------------------------------------
    phys_vmem = _physical_vmem_bytes()
    budget = max(16 * 2 ** 20, int(phys_vmem * 0.70))   # tile-selection budget

    # ---- tm (dtype-aware sublane packing: 8 f32, 16 bf16, 32 int8/fp8) -----
    sub = max(8, 32 // xb)
    if M <= tm:
        tm = M                              # full-dim block: always legal
    else:
        tm = _round_up(tm, sub)
    ni = pl.cdiv(M, tm)

    # ---- tn -----------------------------------------------------------------
    if tn is None:
        tn = 1024 if phys_vmem >= 96 * 2 ** 20 else 512
        if ni == 1:
            # Small-M regime: fatten tn so each weight-strip DMA is >= ~2 MiB
            # and the fixed per-grid-step overhead stops dominating.
            tgt = _round_up(pl.cdiv(2 * 2 ** 20, max(1, K * wb)), 128)
            tn = max(tn, tgt)
    if N <= tn:
        tn = N                              # full-dim block: always legal
    else:
        tn = _round_up(tn, 128)
        nj = pl.cdiv(N, tn)
        # Re-balance the N blocks (avoids e.g. a 512/128 split -> helps even
        # work division across v7x's two TensorCores on the parallel axes).
        tn = _round_up(pl.cdiv(N, nj), 128)
    nj = pl.cdiv(N, tn)

    # ---- tk: whole-K strips when they fit, otherwise K-tiling ---------------
    fixed = 2 * tm * tn * ob + tm * tn * 4 + 2 * tn * 4   # out dbl-buf + acc + bias
    per_k = 2 * (tm * xb + tn * wb)                       # dbl-buffered x/w strips
    if tk is None:
        if fixed + per_k * K <= budget:
            tk = K                          # weight strip fetched once per j
        else:
            tk_max = max(128, (budget - fixed) // per_k)
            tk_max -= tk_max % 128
            tk = 0
            for cand in range(tk_max, 127, -128):
                if K % cand == 0:           # exact divisor: no garbage in the
                    tk = cand               # padded K region of the reduction
                    break
            if tk == 0:
                # TODO(synk): no 128-multiple divisor of K fits the budget;
                # fall back to whole-K strips + raised VMEM limit (masked
                # partial-K tiles would need in-kernel zeroing to accumulate
                # correctly).
                tk = K
    else:
        assert tk == K or (K % tk == 0 and tk % 128 == 0)
    nk = pl.cdiv(K, tk)

    # ---- VMEM limit (relative to this generation's physical VMEM) ----------
    vmem_est = fixed + per_k * tk
    vmem_limit = min(int(phys_vmem * 0.85),
                     max(vmem_est + vmem_est // 4, 32 * 2 ** 20))

    # ---- grid order: bigger operand on the outer axis -> streamed once -----
    x_bytes = M * K * xb
    w_bytes = N * K * wb
    if w_bytes >= x_bytes:
        grid = (nj, ni, nk)
        x_map = lambda j, i, k: (i, k)
        w_map = lambda j, i, k: (k, j)
        b_map = lambda j, i, k: (0, j)
        o_map = lambda j, i, k: (i, j)
    else:
        grid = (ni, nj, nk)
        x_map = lambda i, j, k: (i, k)
        w_map = lambda i, j, k: (k, j)
        b_map = lambda i, j, k: (0, j)
        o_map = lambda i, j, k: (i, j)

    cost = pl.CostEstimate(
        flops=2 * M * N * K,
        transcendentals=0,
        bytes_accessed=x_bytes + w_bytes + N * 4 + M * N * ob,
    )

    return pl.pallas_call(
        _fc_kernel,
        out_shape=jax.ShapeDtypeStruct((M, N), out_dtype),
        grid_spec=pltpu.PrefetchScalarGridSpec(
            num_scalar_prefetch=0,
            grid=grid,
            in_specs=[
                pl.BlockSpec((tm, tk), x_map),   # x tile
                pl.BlockSpec((tk, tn), w_map),   # weight, (K, N) layout
                pl.BlockSpec((1, tn), b_map),    # bias row
            ],
            out_specs=pl.BlockSpec((tm, tn), o_map),
            scratch_shapes=[pltpu.VMEM((tm, tn), jnp.float32)],
        ),
        compiler_params=pltpu.CompilerParams(
            dimension_semantics=("parallel", "parallel", "arbitrary"),
            vmem_limit_bytes=int(vmem_limit),
        ),
        cost_estimate=cost,
    )(x, w_kn, bias2d)


def init_fc_params(key, out_features, in_features=256):
    """Deterministic init mimicking nn.Linear defaults."""
    kw, kb = jax.random.split(key)
    bound = 1.0 / math.sqrt(in_features)
    weight = jax.random.uniform(
        kw, (out_features, in_features), jnp.float32, -bound, bound)
    bias = jax.random.uniform(
        kb, (out_features,), jnp.float32, -bound, bound)
    return weight, bias


if __name__ == "__main__":
    key = jax.random.PRNGKey(0)
    k_x, k_p = jax.random.split(key)

    batch = 16
    in_features = 256     # fc_l default `inp`
    out_features = 640

    x = jax.random.normal(k_x, (batch, in_features), jnp.float32)
    weight, bias = init_fc_params(k_p, out_features, in_features)

    # References: exact f32, and bf16-rounded operands with f32 accumulation
    # (the latter matches the kernel's default compute path bit-for-bit up to
    # summation order).
    y_exact = x @ weight.T + bias
    x_bf = x.astype(jnp.bfloat16).astype(jnp.float32)
    w_bf = weight.astype(jnp.bfloat16).astype(jnp.float32)
    y_ref = x_bf @ w_bf.T + bias

    # 1) default auto-tiled path (bf16 compute, whole-K strips).
    y = fc_l_forward(x, weight, bias)
    jax.block_until_ready(y)
    assert y.shape == (batch, out_features) and y.dtype == x.dtype
    assert jnp.allclose(y, y_ref, atol=2e-4, rtol=1e-3)
    assert jnp.allclose(y, y_exact, atol=5e-2, rtol=5e-2)

    # 2) multi-block N grid including a partial (masked) N tile.
    y2 = fc_l_forward(x, weight, bias, tm=8, tn=256)
    jax.block_until_ready(y2)
    assert jnp.allclose(y2, y_ref, atol=2e-4, rtol=1e-3)

    # 3) K-tiled accumulator path (nk = 2, init/finalize via pl.when).
    y3 = fc_l_forward(x, weight, bias, tk=128)
    jax.block_until_ready(y3)
    assert jnp.allclose(y3, y_ref, atol=2e-4, rtol=1e-3)

    print("KERNEL_OK")
</pallas_src>

<mosaic_0001>
module attributes {stable_mosaic.version = 11 : i64} {
  func.func @_fc_kernel(%arg0: i32, %arg1: i32, %arg2: i32, %arg3: memref<16x256xbf16, #tpu.memory_space<vmem>>, %arg4: memref<256x640xbf16, #tpu.memory_space<vmem>>, %arg5: memref<1x640xf32, #tpu.memory_space<vmem>>, %arg6: memref<16x640xf32, #tpu.memory_space<vmem>>, %arg7: memref<16x640xf32, #tpu.memory_space<vmem>>) attributes {dimension_semantics = [#tpu.dimension_semantics<parallel>, #tpu.dimension_semantics<parallel>, #tpu.dimension_semantics<arbitrary>], iteration_bounds = array<i64: 1, 1, 1>, scalar_prefetch = 0 : i64, scratch_operands = 1 : i64, tpu.core_type = #tpu.core_type<tc>, window_params = [{transform_indices = @transform_0, window_bounds = array<i64: 16, 256>}, {transform_indices = @transform_1, window_bounds = array<i64: 256, 640>}, {transform_indices = @transform_2, window_bounds = array<i64: 1, 640>}, {transform_indices = @transform_3, window_bounds = array<i64: 16, 640>}]} {
    %c0_i32 = arith.constant 0 : i32
    %0 = arith.cmpi eq, %arg2, %c0_i32 : i32
    %1 = arith.extui %0 : i1 to i32
    %c0_i32_0 = arith.constant 0 : i32
    %2 = arith.cmpi ne, %1, %c0_i32_0 : i32
    scf.if %2 {
      %cst_10 = arith.constant 0.000000e+00 : f32
      %12 = vector.broadcast %cst_10 : f32 to vector<16x640xf32>
      %c0_11 = arith.constant 0 : index
      %c0_12 = arith.constant 0 : index
      %13 = vector.load %arg7[%c0_11, %c0_12] : memref<16x640xf32, #tpu.memory_space<vmem>>, vector<16x640xf32>
      tpu.vector_store %arg7[%c0_11, %c0_12], %12 {strides = array<i32>} : memref<16x640xf32, #tpu.memory_space<vmem>>, vector<16x640xf32>,
    } else {
    }
    %c0 = arith.constant 0 : index
    %c0_1 = arith.constant 0 : index
    %3 = vector.load %arg7[%c0, %c0_1] : memref<16x640xf32, #tpu.memory_space<vmem>>, vector<16x640xf32>
    %c0_2 = arith.constant 0 : index
    %c0_3 = arith.constant 0 : index
    %4 = vector.load %arg3[%c0_2, %c0_3] : memref<16x256xbf16, #tpu.memory_space<vmem>>, vector<16x256xbf16>
    %c0_4 = arith.constant 0 : index
    %c0_5 = arith.constant 0 : index
    %5 = vector.load %arg4[%c0_4, %c0_5] : memref<256x640xbf16, #tpu.memory_space<vmem>>, vector<256x640xbf16>
    %cst = arith.constant dense<0.000000e+00> : vector<16x640xf32>
    %6 = tpu.matmul %4, %5, %cst {dimension_numbers = #tpu.dot_dimension_numbers<[1], [0], [0], [1], [0, 0, 1, 1], [], []>} : vector<16x256xbf16>, vector<256x640xbf16>, vector<16x640xf32> -> vector<16x640xf32>
    %7 = arith.addf %3, %6 : vector<16x640xf32>
    %c0_6 = arith.constant 0 : index
    %c0_7 = arith.constant 0 : index
    %8 = vector.load %arg7[%c0_6, %c0_7] : memref<16x640xf32, #tpu.memory_space<vmem>>, vector<16x640xf32>
    tpu.vector_store %arg7[%c0_6, %c0_7], %7 {strides = array<i32>} : memref<16x640xf32, #tpu.memory_space<vmem>>, vector<16x640xf32>,
    %c0_i32_8 = arith.constant 0 : i32
    %9 = arith.cmpi eq, %arg2, %c0_i32_8 : i32
    %10 = arith.extui %9 : i1 to i32
    %c0_i32_9 = arith.constant 0 : i32
    %11 = arith.cmpi ne, %10, %c0_i32_9 : i32
    scf.if %11 {
      %c0_10 = arith.constant 0 : index
      %c0_11 = arith.constant 0 : index
      %12 = vector.load %arg7[%c0_10, %c0_11] : memref<16x640xf32, #tpu.memory_space<vmem>>, vector<16x640xf32>
      %c0_12 = arith.constant 0 : index
      %c0_13 = arith.constant 0 : index
      %13 = vector.load %arg5[%c0_12, %c0_13] : memref<1x640xf32, #tpu.memory_space<vmem>>, vector<1x640xf32>
      %14 = vector.broadcast %13 : vector<1x640xf32> to vector<16x640xf32>
      %15 = arith.addf %12, %14 : vector<16x640xf32>
      %c0_14 = arith.constant 0 : index
      %c0_15 = arith.constant 0 : index
      %16 = vector.load %arg6[%c0_14, %c0_15] : memref<16x640xf32, #tpu.memory_space<vmem>>, vector<16x640xf32>
      tpu.vector_store %arg6[%c0_14, %c0_15], %15 {strides = array<i32>} : memref<16x640xf32, #tpu.memory_space<vmem>>, vector<16x640xf32>,
    } else {
    }
    return
  }
  func.func @transform_0(%arg0: i32, %arg1: i32, %arg2: i32) -> (i32, i32) {
    %c0_i32 = arith.constant 0 : i32
    return %arg1, %arg2 : i32, i32
  }
  func.func @transform_1(%arg0: i32, %arg1: i32, %arg2: i32) -> (i32, i32) {
    %c0_i32 = arith.constant 0 : i32
    return %arg2, %arg0 : i32, i32
  }
  func.func @transform_2(%arg0: i32, %arg1: i32, %arg2: i32) -> (i32, i32) {
    %c0_i32 = arith.constant 0 : i32
    %c0_i32_0 = arith.constant 0 : i32
    return %c0_i32, %arg0 : i32, i32
  }
  func.func @transform_3(%arg0: i32, %arg1: i32, %arg2: i32) -> (i32, i32) {
    %c0_i32 = arith.constant 0 : i32
    return %arg1, %arg0 : i32, i32
  }
}

</mosaic_0001>

<bundles_post_ra>
// kernel: tpu_custom_call.1
= control target key start
LH: loop header
LB: loop body
LE: loop exit
PB: predicated region body
PF: predicated region fallthrough
CT: control target
= control target key end

     0   :  { %8 = vsyncpa [#allocation4], 0  ;;  %s1190_s0 = inlined_call_operand.hbm [shape: bf16[16,256], index: 0, kind: input, shape index: {}]   ;;  %s1191_s1 = inlined_call_operand.hbm [shape: bf16[256,640], index: 1, kind: input, shape index: {}]   ;;  %s1192_s2 = inlined_call_operand.vmem [shape: f32[1,640], index: 2, kind: input, shape index: {}]   ;;  %s1193_s3 = inlined_call_operand.hbm [shape: f32[16,640], index: 3, kind: output, shape index: {}]  }
   0x1   :  { %9 = vsyncpa [#allocation7], 0 }
   0x2   :  { %10 = vsyncpa [#allocation5], 0  ;;  %s1117_s12 = smov [#allocation3]   ;;  %s1045_s16 = scalar_lea.hbm %s1190_s0, 256 }
   0x3   :  { %s16_s13 = sshll.u32 %s1117_s12, 4  ;;  %p1046_p0 = scmp.ne.s32.totalorder %s1190_s0, %s1045_s16  ;;  %s17_s13 = int_to_ptr.vmem [resolvable:$true] %s16_s13 }
   0x4   :  { %p1049_p1 = scmp.lt.u32.totalorder %s1045_s16, %s1190_s0 }
   0x6   :  { %p1051_p2 = pnand %p1049_p1, %p1046_p0 }
   0x8   :  { %1054 = shalt.err (!%p1051_p2)
}
   0x9   :  { %s1055_s21 = scalar_lea.vmem %s17_s13, 256  ;;  %p1060_p4 = scmp.lt.s32.totalorder %s17_s13, %s17_s13 }
   0xa   :  { %p1056_p3 = scmp.ne.s32.totalorder %s17_s13, %s1055_s21  ;;  %p1061_p5 = scmp.lt.s32.totalorder %s1055_s21, %s1055_s21 }
   0xc   :  { %p1062_p6 = por %p1061_p5, %p1060_p4 }
   0xe   :  { %p1063_p7 = pnand %p1062_p6, %p1056_p3 }
  0x10   :  { %1066 = shalt.err (!%p1063_p7)
}
  0x11   :  { %s1118_s22 = smov 128   ;;  %s1119_s23 = smov 8  }
  0x12   :  { %22 = dma.hbm_to_vmem [thread:$0]  %s1190_s0, 256, %s17_s13, [#allocation4], %s1118_s22, %s1118_s22, %s1119_s23  }
  0x13   :  { %s1120_s26 = smov [#allocation6]   ;;  %s1067_s30 = scalar_lea.hbm %s1191_s1, 10240 }
  0x14   :  { %s28_s27 = sshll.u32 %s1120_s26, 4  ;;  %p1068_p8 = scmp.ne.s32.totalorder %s1191_s1, %s1067_s30  ;;  %s29_s27 = int_to_ptr.vmem [resolvable:$true] %s28_s27 }
  0x15   :  { %p1071_p9 = scmp.lt.u32.totalorder %s1067_s30, %s1191_s1 }
  0x17   :  { %p1073_p10 = pnand %p1071_p9, %p1068_p8 }
  0x19   :  { %1076 = shalt.err (!%p1073_p10)
}
  0x1a   :  { %s1077_s8 = scalar_lea.vmem %s29_s27, 10240  ;;  %p1082_p12 = scmp.lt.s32.totalorder %s29_s27, %s29_s27 }
  0x1b   :  { %p1078_p11 = scmp.ne.s32.totalorder %s29_s27, %s1077_s8  ;;  %p1083_p13 = scmp.lt.s32.totalorder %s1077_s8, %s1077_s8 }
  0x1d   :  { %p1084_p0 = por %p1083_p13, %p1082_p12 }
  0x1f   :  { %p1085_p1 = pnand %p1084_p0, %p1078_p11 }
  0x21   :  { %1088 = shalt.err (!%p1085_p1)
}
  0x22   :  { %s1121_s0 = smov 320   ;;  %s1122_s9 = smov 20  }
  0x23   :  { %34 = dma.hbm_to_vmem [thread:$0]  %s1191_s1, 10240, %s29_s27, [#allocation7], %s1121_s0, %s1121_s0, %s1122_s9  }
  0x24   :  { %1111 = dma.done.wait [#allocation4], 256  }
  0x25   :  { %1112 = vsyncadd [#allocation4], 4294967040 }
  0x26   :  { %1113 = dma.done.wait [#allocation7], 10240  }
  0x27   :  { %1114 = vsyncadd [#allocation7], 4294957056  ;;  %v930_v0 = vld [vmem:[#allocation6 + $0x4] ss:$20 sps:$4 sm:$0xff]   ;;  %v932_v1 = vld [vmem:[#allocation6] ss:$20 sps:$4 sm:$0xff]  }
  0x28   :  { %592 = vmatprep.subr.bf16.mxu0 %v930_v0  ;;  %v933_v2 = vld [vmem:[#allocation6 + $0x2c] ss:$20 sps:$4 sm:$0xff]   ;;  %v935_v3 = vld [vmem:[#allocation6 + $0x28] ss:$20 sps:$4 sm:$0xff]   ;;  %v938_v5 = vld [vmem:[#allocation6 + $0x50] ss:$20 sps:$4 sm:$0xff]  }
  0x29   :  { %593 = vmatpush1.bf16.msra.mxu0 %v932_v1  ;;  %v936_v4 = vld [vmem:[#allocation6 + $0x54] ss:$20 sps:$4 sm:$0xff]   ;;  %v939_v6 = vld [vmem:[#allocation6 + $0x7c] ss:$20 sps:$4 sm:$0xff]   ;;  %v941_v7 = vld [vmem:[#allocation6 + $0x78] ss:$20 sps:$4 sm:$0xff]  }
  0x2a   :  { %594 = vmatprep.subr.bf16.mxu0 %v933_v2  ;;  %v954_v8 = vld [vmem:[#allocation6 + $0xc] ss:$20 sps:$4 sm:$0xff]   ;;  %v942_v9 = vld [vmem:[#allocation6 + $0xa4] ss:$20 sps:$4 sm:$0xff]   ;;  %v958_v10 = vld [vmem:[#allocation6 + $0x8] ss:$20 sps:$4 sm:$0xff]  }
  0x2b   :  { %635 = vmatprep.subr.bf16.mxu1 %v954_v8  ;;  %v960_v11 = vld [vmem:[#allocation6 + $0x34] ss:$20 sps:$4 sm:$0xff]   ;;  %v945_v13 = vld [vmem:[#allocation6 + $0xcc] ss:$20 sps:$4 sm:$0xff]   ;;  %v964_v14 = vld [vmem:[#allocation6 + $0x30] ss:$20 sps:$4 sm:$0xff]  }
  0x2c   :  { %636 = vmatpush1.bf16.msra.mxu1 %v958_v10  ;;  %v944_v12 = vld [vmem:[#allocation6 + $0xa0] ss:$20 sps:$4 sm:$0xff]   ;;  %v966_v15 = vld [vmem:[#allocation6 + $0x5c] ss:$20 sps:$4 sm:$0xff]   ;;  %v970_v17 = vld [vmem:[#allocation6 + $0x58] ss:$20 sps:$4 sm:$0xff]  }
  0x2d   :  { %595 = vmatpush1.bf16.msra.mxu0 %v935_v3  ;;  %637 = vmatprep.subr.bf16.mxu1 %v960_v11  ;;  %v947_v16 = vld [vmem:[#allocation6 + $0xc8] ss:$20 sps:$4 sm:$0xff]   ;;  %v972_v18 = vld [vmem:[#allocation6 + $0x84] ss:$20 sps:$4 sm:$0xff]   ;;  %v976_v20 = vld [vmem:[#allocation6 + $0x80] ss:$20 sps:$4 sm:$0xff]  }
  0x2e   :  { %596 = vmatprep.subr.bf16.mxu0 %v936_v4  ;;  %v948_v19 = vld [vmem:[#allocation6 + $0xf4] ss:$20 sps:$4 sm:$0xff]   ;;  %v950_v21 = vld [vmem:[#allocation6 + $0xf0] ss:$20 sps:$4 sm:$0xff]   ;;  %v978_v22 = vld [vmem:[#allocation6 + $0xac] ss:$20 sps:$4 sm:$0xff]  }
  0x2f   :  { %v951_v23 = vld [vmem:[#allocation6 + $0x11c] ss:$20 sps:$4 sm:$0xff]   ;;  %v953_v24 = vld [vmem:[#allocation6 + $0x118] ss:$20 sps:$4 sm:$0xff]   ;;  %v984_v26 = vld [vmem:[#allocation6 + $0xd4] ss:$20 sps:$4 sm:$0xff]  }
  0x30   :  { %638 = vmatpush1.bf16.msra.mxu1 %v964_v14  ;;  %v982_v25 = vld [vmem:[#allocation6 + $0xa8] ss:$20 sps:$4 sm:$0xff]   ;;  %v956_v27 = vld [vmem:[#allocation6 + $0x144] ss:$20 sps:$4 sm:$0xff]   ;;  %v959_v29 = vld [vmem:[#allocation6 + $0x140] ss:$20 sps:$4 sm:$0xff]  }
  0x31   :  { %597 = vmatpush1.bf16.msra.mxu0 %v938_v5  ;;  %639 = vmatprep.subr.bf16.mxu1 %v966_v15  ;;  %v988_v28 = vld [vmem:[#allocation6 + $0xd0] ss:$20 sps:$4 sm:$0xff]   ;;  %v962_v30 = vld [vmem:[#allocation6 + $0x16c] ss:$20 sps:$4 sm:$0xff]   ;;  %v1170_v32 = vld [vmem:[#allocation3 + $0x4] ss:$8 sps:$4 sm:$0xff]  }
  0x32   :  { %598 = vmatprep.subr.bf16.mxu0 %v939_v6  ;;  %v990_v31 = vld [vmem:[#allocation6 + $0xfc] ss:$20 sps:$4 sm:$0xff]   ;;  %v994_v34 = vld [vmem:[#allocation6 + $0xf8] ss:$20 sps:$4 sm:$0xff]   ;;  %624 = vmatprep.mubr.bf16.mxu0 %v1170_v32  ;;  %v968_v36 = vld [vmem:[#allocation6 + $0x194] ss:$20 sps:$4 sm:$0xff]  }
  0x33   :  { %v965_v33 = vld [vmem:[#allocation6 + $0x168] ss:$20 sps:$4 sm:$0xff]   ;;  %v996_v35 = vld [vmem:[#allocation6 + $0x124] ss:$20 sps:$4 sm:$0xff]   ;;  %667 = vmatprep.mubr.bf16.mxu1 %v1170_v32  ;;  %v1000_v38 = vld [vmem:[#allocation6 + $0x120] ss:$20 sps:$4 sm:$0xff]  }
  0x34   :  { %640 = vmatpush1.bf16.msra.mxu1 %v970_v17  ;;  %v971_v37 = vld [vmem:[#allocation6 + $0x190] ss:$20 sps:$4 sm:$0xff]   ;;  %v1004_v39 = vld [vmem:[#allocation6 + $0x14c] ss:$20 sps:$4 sm:$0xff]   ;;  %v1007_v42 = vld [vmem:[#allocation6 + $0x148] ss:$20 sps:$4 sm:$0xff]  }
  0x35   :  { %599 = vmatpush1.bf16.msra.mxu0 %v941_v7  ;;  %641 = vmatprep.subr.bf16.mxu1 %v972_v18  ;;  %v974_v40 = vld [vmem:[#allocation6 + $0x1bc] ss:$20 sps:$4 sm:$0xff]   ;;  %v977_v41 = vld [vmem:[#allocation6 + $0x1b8] ss:$20 sps:$4 sm:$0xff]   ;;  %v1010_v43 = vld [vmem:[#allocation6 + $0x174] ss:$20 sps:$4 sm:$0xff]   ;;  %v754_v18 = vlaneseq }
  0x36   :  { %600 = vmatprep.subr.bf16.mxu0 %v942_v9  ;;  %v980_v44 = vld [vmem:[#allocation6 + $0x1e4] ss:$20 sps:$4 sm:$0xff]   ;;  %v983_v46 = vld [vmem:[#allocation6 + $0x1e0] ss:$20 sps:$4 sm:$0xff]   ;;  %v1015_v47 = vld [vmem:[#allocation6 + $0x19c] ss:$20 sps:$4 sm:$0xff]  }
  0x37   :  { %v1012_v45 = vld [vmem:[#allocation6 + $0x170] ss:$20 sps:$4 sm:$0xff]   ;;  %v986_v48 = vld [vmem:[#allocation6 + $0x20c] ss:$20 sps:$4 sm:$0xff]   ;;  %v989_v49 = vld [vmem:[#allocation6 + $0x208] ss:$20 sps:$4 sm:$0xff]  }
  0x38   :  { %642 = vmatpush1.bf16.msra.mxu1 %v976_v20  ;;  %v1017_v50 = vld [vmem:[#allocation6 + $0x198] ss:$20 sps:$4 sm:$0xff]   ;;  %v992_v52 = vld [vmem:[#allocation6 + $0x234] ss:$20 sps:$4 sm:$0xff]   ;;  %v995_v53 = vld [vmem:[#allocation6 + $0x230] ss:$20 sps:$4 sm:$0xff]  }
  0x39   :  { %601 = vmatpush1.bf16.msra.mxu0 %v944_v12  ;;  %643 = vmatprep.subr.bf16.mxu1 %v978_v22  ;;  %v1020_v51 = vld [vmem:[#allocation6 + $0x1c4] ss:$20 sps:$4 sm:$0xff]   ;;  %v1022_v54 = vld [vmem:[#allocation6 + $0x1c0] ss:$20 sps:$4 sm:$0xff]   ;;  %v998_v56 = vld [vmem:[#allocation6 + $0x25c] ss:$20 sps:$4 sm:$0xff]  }
  0x3a   :  { %602 = vmatprep.subr.bf16.mxu0 %v945_v13  ;;  %v1025_v55 = vld [vmem:[#allocation6 + $0x1ec] ss:$20 sps:$4 sm:$0xff]   ;;  %v1027_v58 = vld [vmem:[#allocation6 + $0x1e8] ss:$20 sps:$4 sm:$0xff]   ;;  %v1008_v60 = vld [vmem:[#allocation6 + $0x150] ss:$20 sps:$4 sm:$0xff]  }
  0x3b   :  { %v1001_v57 = vld [vmem:[#allocation6 + $0x258] ss:$20 sps:$4 sm:$0xff]   ;;  %v1030_v59 = vld [vmem:[#allocation6 + $0x214] ss:$20 sps:$4 sm:$0xff]   ;;  %v1032_v62 = vld [vmem:[#allocation6 + $0x210] ss:$20 sps:$4 sm:$0xff]  }
  0x3c   :  { %644 = vmatpush1.bf16.msra.mxu1 %v982_v25  ;;  %v1006_v61 = vld [vmem:[#allocation3] ss:$8 sps:$4 sm:$0xff]   ;;  %v1018_v5 = vld [vmem:[#allocation6 + $0x1a0] ss:$20 sps:$4 sm:$0xff]   ;;  %v1023_v8 = vld [vmem:[#allocation6 + $0x1c8] ss:$20 sps:$4 sm:$0xff]  }
  0x3d   :  { %603 = vmatpush1.bf16.msra.mxu0 %v947_v16  ;;  %645 = vmatprep.subr.bf16.mxu1 %v984_v26  ;;  %v1009_v63 = vld [vmem:[#allocation6 + $0x10] ss:$20 sps:$4 sm:$0xff]   ;;  %v1013_v1 = vld [vmem:[#allocation6 + $0x178] ss:$20 sps:$4 sm:$0xff]   ;;  %v1042_v6 = vld [vmem:[#allocation6 + $0x260] ss:$20 sps:$4 sm:$0xff]  }
  0x3e   :  { %604 = vmatprep.subr.bf16.mxu0 %v948_v19  ;;  %v1035_v0 = vld [vmem:[#allocation6 + $0x23c] ss:$20 sps:$4 sm:$0xff]   ;;  %v1037_v2 = vld [vmem:[#allocation6 + $0x238] ss:$20 sps:$4 sm:$0xff]   ;;  %v1019_v7 = vld [vmem:[#allocation6 + $0x60] ss:$20 sps:$4 sm:$0xff]  }
  0x3f   :  { %v1014_v3 = vld [vmem:[#allocation6 + $0x38] ss:$20 sps:$4 sm:$0xff]   ;;  %v1024_v9 = vld [vmem:[#allocation6 + $0x88] ss:$20 sps:$4 sm:$0xff]   ;;  %v1028_v10 = vld [vmem:[#allocation6 + $0x1f0] ss:$20 sps:$4 sm:$0xff]  }
  0x40   :  { %646 = vmatpush1.bf16.msra.mxu1 %v988_v28  ;;  %v1040_v4 = vld [vmem:[#allocation6 + $0x264] ss:$20 sps:$4 sm:$0xff]   ;;  %v1038_v14 = vld [vmem:[#allocation6 + $0x240] ss:$20 sps:$4 sm:$0xff]   ;;  %v1043_v16 = vld [vmem:[#allocation6 + $0x268] ss:$20 sps:$4 sm:$0xff]  }
  0x41   :  { %605 = vmatpush1.bf16.msra.mxu0 %v950_v21  ;;  %647 = vmatprep.subr.bf16.mxu1 %v990_v31  ;;  %v1029_v11 = vld [vmem:[#allocation6 + $0xb0] ss:$20 sps:$4 sm:$0xff]   ;;  %v1033_v12 = vld [vmem:[#allocation6 + $0x218] ss:$20 sps:$4 sm:$0xff]   ;;  %v1039_v15 = vld [vmem:[#allocation6 + $0x100] ss:$20 sps:$4 sm:$0xff]  }
  0x42   :  { %606 = vmatprep.subr.bf16.mxu0 %v951_v23  ;;  %v1034_v13 = vld [vmem:[#allocation6 + $0xd8] ss:$20 sps:$4 sm:$0xff]   ;;  %v1044_v17 = vld [vmem:[#allocation6 + $0x128] ss:$20 sps:$4 sm:$0xff]   ;;  %v755_v19 = vshrl.u32 %v754_v18, 7 }
  0x43   :  { %v752_v21 = vld [vmem:[%s1192_s2] sm:$0x1f]  ;;  %s1123_s2 = smov [#allocation8]  }
  0x44   :  { %648 = vmatpush1.bf16.msra.mxu1 %v994_v34  ;;  %v756_v20 = vsub.s32 0, %v755_v19  ;;  %v760_v22 = vsub.s32 1, %v755_v19  ;;  %v768_v34 = vsub.s32 3, %v755_v19  ;;  %s804_s13 = sshll.u32 %s1123_s2, 4  ;;  %s805_s13 = int_to_ptr.vmem [resolvable:$true] %s804_s13 }
  0x45   :  { %607 = vmatpush1.bf16.msra.mxu0 %v953_v24  ;;  %649 = vmatprep.subr.bf16.mxu1 %v996_v35  ;;  %s1089_s14 = scalar_lea.vmem %s805_s13, 1280  ;;  %p1094_p3 = scmp.lt.s32.totalorder %s805_s13, %s805_s13 }
  0x46   :  { %608 = vmatprep.subr.bf16.mxu0 %v956_v27  ;;  %v757_v23 = vrot.slane %v752_v21, %v756_v20  ;;  %v761_v24 = vrot.slane %v752_v21, %v760_v22  ;;  %p1090_p2 = scmp.ne.s32.totalorder %s805_s13, %s1089_s14  ;;  %p1095_p4 = scmp.lt.s32.totalorder %s1089_s14, %s1089_s14 }
  0x48   :  { %650 = vmatpush1.bf16.msra.mxu1 %v1000_v38  ;;  %p1096_p5 = por %p1095_p4, %p1094_p3 }
  0x49   :  { %609 = vmatpush1.bf16.msra.mxu0 %v959_v29  ;;  %651 = vmatprep.subr.bf16.mxu1 %v1004_v39 }
  0x4a   :  { %610 = vmatprep.subr.bf16.mxu0 %v962_v30  ;;  %p1097_p6 = pnand %p1096_p5, %p1090_p2 }
  0x4c   :  { %652 = vmatpush1.bf16.msra.mxu1 %v1007_v42 }
  0x4d   :  { %611 = vmatpush1.bf16.msra.mxu0 %v965_v33  ;;  %653 = vmatprep.subr.bf16.mxu1 %v1010_v43  ;;  %v764_v33 = vsub.s32 2, %v755_v19 }
  0x4e   :  { %612 = vmatprep.subr.bf16.mxu0 %v968_v36  ;;  %v769_v36 = vrot.slane %v752_v21, %v768_v34 }
  0x4f   :  { %v765_v35 = vrot.slane %v752_v21, %v764_v33 }
  0x50   :  { %654 = vmatpush1.bf16.msra.mxu1 %v1012_v45  ;;  %v772_v45 = vsub.s32 4, %v755_v19 }
  0x51   :  { %613 = vmatpush1.bf16.msra.mxu0 %v971_v37  ;;  %655 = vmatprep.subr.bf16.mxu1 %v1015_v47 }
  0x52   :  { %614 = vmatprep.subr.bf16.mxu0 %v974_v40  ;;  %v773_v47 = vrot.slane %v752_v21, %v772_v45 }
  0x54   :  { %656 = vmatpush1.bf16.msra.mxu1 %v1017_v50 }
  0x55   :  { %615 = vmatpush1.bf16.msra.mxu0 %v977_v41  ;;  %657 = vmatprep.subr.bf16.mxu1 %v1020_v51 }
  0x56   :  { %616 = vmatprep.subr.bf16.mxu0 %v980_v44 }
  0x58   :  { %658 = vmatpush1.bf16.msra.mxu1 %v1022_v54 }
  0x59   :  { %617 = vmatpush1.bf16.msra.mxu0 %v983_v46  ;;  %659 = vmatprep.subr.bf16.mxu1 %v1025_v55 }
  0x5a   :  { %618 = vmatprep.subr.bf16.mxu0 %v986_v48 }
  0x5c   :  { %660 = vmatpush1.bf16.msra.mxu1 %v1027_v58 }
  0x5d   :  { %619 = vmatpush1.bf16.msra.mxu0 %v989_v49  ;;  %661 = vmatprep.subr.bf16.mxu1 %v1030_v59 }
  0x5e   :  { %620 = vmatprep.subr.bf16.mxu0 %v992_v52 }
  0x60   :  { %662 = vmatpush1.bf16.msra.mxu1 %v1032_v62 }
  0x61   :  { %621 = vmatpush1.bf16.msra.mxu0 %v995_v53  ;;  %663 = vmatprep.subr.bf16.mxu1 %v1035_v0 }
  0x62   :  { %622 = vmatprep.subr.bf16.mxu0 %v998_v56 }
  0x64   :  { %664 = vmatpush1.bf16.msra.mxu1 %v1037_v2 }
  0x65   :  { %623 = vmatpush1.bf16.msra.mxu0 %v1001_v57  ;;  %665 = vmatprep.subr.bf16.mxu1 %v1040_v4 }
  0x66   :  { %899 = vmatprep.subr.bf16.mxu0 %v1008_v60 }
  0x68   :  { %625 = vmatmul.mubr.bf16.vlgmr.msra.gmra.mrb[0].mxu0 %v1006_v61  ;;  %666 = vmatpush1.bf16.msra.mxu1 %v1042_v6 }
  0x69   :  { %900 = vmatpush3.bf16.msra.mxu0 %v1009_v63  ;;  %710 = vmatprep.mubr.bf16.mxu0 %v1170_v32 }
  0x6a   :  { %901 = vmatprep.subr.bf16.mxu0 %v1013_v1 }
  0x6b   :  { %668 = vmatmul.mubr.bf16.vlgmr.msra.gmra.mrb[0].mxu1 %v1006_v61 }
  0x6d   :  { %902 = vmatpush3.bf16.msra.mxu0 %v1014_v3 }
  0x6e   :  { %903 = vmatprep.subr.bf16.mxu0 %v1018_v5 }
  0x71   :  { %904 = vmatpush3.bf16.msra.mxu0 %v1019_v7 }
  0x72   :  { %905 = vmatprep.subr.bf16.mxu0 %v1023_v8 }
  0x75   :  { %906 = vmatpush3.bf16.msra.mxu0 %v1024_v9 }
  0x76   :  { %907 = vmatprep.subr.bf16.mxu0 %v1028_v10 }
  0x79   :  { %908 = vmatpush3.bf16.msra.mxu0 %v1029_v11 }
  0x7a   :  { %909 = vmatprep.subr.bf16.mxu0 %v1033_v12 }
  0x7d   :  { %910 = vmatpush3.bf16.msra.mxu0 %v1034_v13 }
  0x7e   :  { %911 = vmatprep.subr.bf16.mxu0 %v1038_v14 }
  0x81   :  { %912 = vmatpush3.bf16.msra.mxu0 %v1039_v15 }
  0x82   :  { %913 = vmatprep.subr.bf16.mxu0 %v1043_v16 }
  0x85   :  { %914 = vmatpush3.bf16.msra.mxu0 %v1044_v17 }
  0x88   :  { %711 = vmatmul.mubr.bf16.vlgmr.msra.gmra.mrb[4].mxu0 %v1006_v61 }
 0x13b   :  { %v626_v25 = vpop.f32.mrb[0].mxu0 }
 0x13c   :  { %v779_v26 = vadd.f32 %v757_v23, %v626_v25  ;;  %v628_v27 = vpop.f32.mrb[1].mxu0 }
 0x13d   :  { %v780_v28 = vadd.f32 %v761_v24, %v628_v27  ;;  %v630_v29 = vpop.f32.mrb[2].mxu0 }
 0x13e   :  { %789 = vst [vmem:[#allocation8] sm:$0xff] %v779_v26  ;;  %v784_v30 = vadd.f32 %v757_v23, %v630_v29  ;;  %v632_v31 = vpop.f32.mrb[3].mxu0  ;;  %v669_v37 = vpop.f32.mrb[0].mxu1 }
 0x13f   :  { %790 = vst [vmem:[#allocation8 + $0x8] sm:$0xff] %v780_v28  ;;  %v785_v32 = vadd.f32 %v761_v24, %v632_v31  ;;  %v781_v38 = vadd.f32 %v765_v35, %v669_v37  ;;  %v671_v39 = vpop.f32.mrb[1].mxu1 }
 0x140   :  { %794 = vst [vmem:[#allocation8 + $0x28] sm:$0xff] %v784_v30  ;;  %v782_v40 = vadd.f32 %v769_v36, %v671_v39  ;;  %v673_v41 = vpop.f32.mrb[2].mxu1 }
 0x141   :  { %795 = vst [vmem:[#allocation8 + $0x30] sm:$0xff] %v785_v32  ;;  %791 = vst [vmem:[#allocation8 + $0x10] sm:$0xff] %v781_v38  ;;  %v786_v42 = vadd.f32 %v765_v35, %v673_v41  ;;  %v675_v43 = vpop.f32.mrb[3].mxu1 }
 0x142   :  { %792 = vst [vmem:[#allocation8 + $0x18] sm:$0xff] %v782_v40  ;;  %v787_v44 = vadd.f32 %v769_v36, %v675_v43 }
 0x143   :  { %796 = vst [vmem:[#allocation8 + $0x38] sm:$0xff] %v786_v42 }
 0x144   :  { %797 = vst [vmem:[#allocation8 + $0x40] sm:$0xff] %v787_v44 }
 0x15b   :  { %v915_v46 = vpop.f32.mrb[4].mxu0 }
 0x15c   :  { %v916_v48 = vpop.f32.mrb[5].mxu0 }
 0x15d   :  { %v917_v49 = vadd.f32 %v916_v48, %v915_v46  ;;  %v918_v50 = vpop.f32.mrb[6].mxu0 }
 0x15e   :  { %v919_v51 = vpop.f32.mrb[7].mxu0 }
 0x15f   :  { %v783_v52 = vadd.f32 %v917_v49, %v773_v47  ;;  %v920_v53 = vadd.f32 %v919_v51, %v918_v50 }
 0x161   :  { %793 = vst [vmem:[#allocation8 + $0x20] sm:$0xff] %v783_v52  ;;  %v788_v54 = vadd.f32 %v920_v53, %v773_v47 }
 0x163   :  { %798 = vst [vmem:[#allocation8 + $0x48] sm:$0xff] %v788_v54 }
 0x164   :  { %1100 = shalt.err (!%p1097_p6)
}
 0x165   :  { %s1101_s17 = scalar_lea.hbm %s1193_s3, 1280 }
 0x166   :  { %p1102_p7 = scmp.ne.s32.totalorder %s1193_s3, %s1101_s17  ;;  %p1105_p8 = scmp.lt.u32.totalorder %s1101_s17, %s1193_s3 }
 0x168   :  { %p1107_p9 = pnand %p1105_p8, %p1102_p7 }
 0x16a   :  { %1110 = shalt.err (!%p1107_p9)
}
 0x16b   :  { %s1124_s22 = smov 640   ;;  %s1125_s23 = smov 40  }
 0x16c   :  { %810 = dma.vmem_to_hbm [thread:$0]  %s805_s13, 1280, %s1193_s3, [#allocation5], %s1124_s22, %s1124_s22, %s1125_s23  }
 0x16d   :  { %1115 = dma.done.wait [#allocation5], 1280  }
 0x16e   :  { %1116 = vsyncadd [#allocation5], 4294966016 }
 0x16f   :  { %814 = vsyncpa [#allocation4], 1 }
 0x170   :  { %815 = vsyncpa [#allocation7], 1 }
 0x171   :  { %816 = vsyncpa [#allocation5], 1 }

</bundles_post_ra>
